<compile_context>
chip_gen: v5e
topology: v5e:2x2
jax: 0.10.0
libtpu: 0.0.40
codegen_flags: <defaults>
</compile_context>

<pallas_src>
import jax
import jax.numpy as jnp
from jax.experimental import pallas as pl
from jax.experimental.pallas import tpu as pltpu


def _round_up(x, m):
    return (x + m - 1) // m * m


def _vmem_capacity_bytes():
    """Per-core VMEM capacity; conservative 64 MiB (v7x-sized) fallback."""
    try:
        cap = getattr(pltpu.get_tpu_info(), "vmem_capacity_bytes", None)
        if cap:
            return int(cap)
    except Exception:
        pass
    return 64 * 1024 * 1024


def _pick_query_tile(n_query):
    """<=128 sublanes; prefer >=2 query tiles so the 'parallel' axis has work
    (megacore on v7x) instead of collapsing the grid to one step."""
    q16 = _round_up(n_query, 16)
    tq = min(128, q16)
    if _round_up(n_query, tq) // tq < 2:
        half = _round_up(max(16, (tq + 1) // 2), 16)
        if half < tq and _round_up(n_query, half) // half >= 2:
            tq = half
    return tq


def _make_ntl_kernel(n_pos, group_size, d_pad, n_groups):
    """Kernel factory; slice ordering metadata (n_pos) is static."""

    def kernel(b_ref, zq_ref, mflat_ref, zct_ref, out_ref, acc_ref):
        # b_ref    : SMEM (1,) f32                 fc bias
        # zq_ref   : VMEM (tq, D_pad) bf16         query tile (zero padded)
        # mflat_ref: VMEM (D_pad, g*D_pad) bf16    w_s*M_s blocks, 128-aligned
        # zct_ref  : VMEM (D_pad, C_pad) bf16      z_c^T (zero padded)
        # out_ref  : VMEM (tq, C_pad) f32          logits tile (lane dense)
        # acc_ref  : VMEM (tq, C_pad) f32          accumulator across groups
        j = pl.program_id(1)  # slice-group index ("arbitrary", innermost)

        @pl.when(j == 0)
        def _init():
            acc_ref[...] = jnp.zeros_like(acc_ref)

        def slice_score(s):
            # stage 1: z_q @ (w_s * M_s)   -> (tq, D_pad), f32 acc on MXU
            off = pl.multiple_of(s * d_pad, 128)
            m_s = mflat_ref[:, pl.ds(off, d_pad)]
            t = jnp.dot(zq_ref[...], m_s, preferred_element_type=jnp.float32)
            # stage 2: (z_q w_s M_s) @ z_c^T -> (tq, C_pad), f32 acc on MXU
            return jnp.dot(t.astype(jnp.bfloat16), zct_ref[...],
                           preferred_element_type=jnp.float32)

        # Local split between positive-weight slices (use max) and
        # negative-weight slices (use min); |w| is already folded into M_flat.
        if n_groups == 1:
            split = min(max(n_pos, 0), group_size)                    # static
        else:
            split = jnp.clip(n_pos - j * group_size, 0, group_size)   # dynamic

        @pl.loop(0, split)
        def _pos(s):
            acc_ref[...] += jnp.maximum(slice_score(s), 0.0)

        @pl.loop(split, group_size)
        def _neg(s):
            acc_ref[...] += jnp.minimum(slice_score(s), 0.0)

        @pl.when(j == pl.num_programs(1) - 1)
        def _finalize():
            out_ref[...] = acc_ref[...] + b_ref[0]

    return kernel


def ntl_relation_forward(z_q, z_c, M, fc_w, fc_b, *, slice_group=None):
    """Pallas forward for NTLRelationModule (eval mode).

    NOTE: weight folding / slice reordering happens host-side and requires
    concrete fc_w (typical inference usage); z_q / z_c / M may be traced.
    """
    n_query, d = z_q.shape
    n_class, dc = z_c.shape
    n_slice = M.shape[0]
    assert dc == d and M.shape[1:] == (d, d)
    fc_w = jnp.asarray(fc_w, jnp.float32).reshape(-1)
    fc_b = jnp.asarray(fc_b, jnp.float32).reshape(-1)

    d_pad = _round_up(d, 128)
    c_pad = _round_up(n_class, 128)
    tq = _pick_query_tile(n_query)
    q_pad = _round_up(n_query, tq)
    n_q_tiles = q_pad // tq

    # ---- fold signed fc weight into M, reorder positive-weight slices first --
    n_pos = int(jnp.sum(fc_w >= 0))                  # host-side (concrete fc_w)
    order = jnp.argsort((fc_w < 0).astype(jnp.int32))
    m_scaled = (fc_w[:, None, None] * M.astype(jnp.float32))[order]

    # ---- VMEM budget -> slice-group size + explicit scoped-VMEM limit --------
    vmem_cap = _vmem_capacity_bytes()
    budget = int(vmem_cap * 0.75)
    per_slice_m = d_pad * d_pad * 2                      # bf16 per-slice block
    fixed = (2 * tq * d_pad * 2       # z_q tiles (pipelined x2, bf16)
             + d_pad * c_pad * 2      # z_c^T resident (Buffered(1), bf16)
             + 2 * tq * c_pad * 4     # out tiles (pipelined x2, f32)
             + tq * c_pad * 4)        # f32 accumulator scratch
    if slice_group is None:
        if fixed + n_slice * per_slice_m <= budget:
            slice_group = n_slice                        # M fully resident
        else:
            slice_group = max(1, (budget - fixed) // (2 * per_slice_m))
    slice_group = int(max(1, min(slice_group, n_slice)))
    n_slice_pad = _round_up(n_slice, slice_group)
    n_groups = n_slice_pad // slice_group

    m_bufs = 1 if n_groups == 1 else 2
    need = fixed + m_bufs * slice_group * per_slice_m
    vmem_limit = int(need * 1.4) + (2 << 20)
    vmem_limit = max(vmem_limit, 16 << 20)      # never below the smallest default
    vmem_limit = min(vmem_limit, int(vmem_cap * 0.9))

    # ---- padded, lane-dense operands ------------------------------------------
    zq_p = jnp.zeros((q_pad, d_pad), jnp.bfloat16)
    zq_p = zq_p.at[:n_query, :d].set(z_q.astype(jnp.bfloat16))
    zct_p = jnp.zeros((d_pad, c_pad), jnp.bfloat16)
    zct_p = zct_p.at[:d, :n_class].set(z_c.astype(jnp.bfloat16).T)
    m_p = jnp.zeros((n_slice_pad, d_pad, d_pad), jnp.float32)
    m_p = m_p.at[:n_slice, :d, :d].set(m_scaled)
    # M_flat[d, s*D_pad + e] = w_s * M[s, d, e]; per-slice blocks laid out along
    # the lane axis, each starting on a 128-lane boundary.
    m_flat = jnp.transpose(m_p, (1, 0, 2)).reshape(
        d_pad, n_slice_pad * d_pad).astype(jnp.bfloat16)

    flops = 2 * q_pad * d_pad * n_slice_pad * (d_pad + c_pad)
    bytes_accessed = (q_pad * d_pad * 2 + d_pad * c_pad * 2
                      + n_q_tiles * d_pad * n_slice_pad * d_pad * 2
                      + q_pad * c_pad * 4 + 8)

    kernel = _make_ntl_kernel(n_pos=n_pos, group_size=slice_group,
                              d_pad=d_pad, n_groups=n_groups)

    # Single-buffer operands whose index map is constant over the whole grid.
    m_kwargs = {"pipeline_mode": pl.Buffered(1)} if n_groups == 1 else {}
    zq_kwargs = {"pipeline_mode": pl.Buffered(1)} if n_q_tiles == 1 else {}

    out = pl.pallas_call(
        kernel,
        out_shape=jax.ShapeDtypeStruct((q_pad, c_pad), jnp.float32),
        grid_spec=pltpu.PrefetchScalarGridSpec(
            num_scalar_prefetch=0,
            grid=(n_q_tiles, n_groups),
            in_specs=[
                pl.BlockSpec(memory_space=pltpu.SMEM),                 # fc bias
                pl.BlockSpec((tq, d_pad), lambda i, j: (i, 0), **zq_kwargs),
                pl.BlockSpec((d_pad, slice_group * d_pad),
                             lambda i, j: (0, j), **m_kwargs),
                pl.BlockSpec((d_pad, c_pad), lambda i, j: (0, 0),
                             pipeline_mode=pl.Buffered(1)),            # z_c^T
            ],
            out_specs=pl.BlockSpec((tq, c_pad), lambda i, j: (i, 0)),
            scratch_shapes=[pltpu.VMEM((tq, c_pad), jnp.float32)],
        ),
        compiler_params=pltpu.CompilerParams(
            dimension_semantics=("parallel", "arbitrary"),
            vmem_limit_bytes=vmem_limit,
        ),
        cost_estimate=pl.CostEstimate(
            flops=flops, transcendentals=0, bytes_accessed=bytes_accessed),
    )(fc_b, zq_p, m_flat, zct_p)

    return out[:n_query, :n_class]


def init_params(key, input_dim, n_slice):
    """Deterministic re-implementation of NTLRelationModule.__init__ params."""
    k_m, k_w, k_b = jax.random.split(key, 3)
    M = jax.random.normal(k_m, (n_slice, input_dim, input_dim), dtype=jnp.float32)
    fro = jnp.sqrt(jnp.sum(M * M, axis=(1, 2), keepdims=True))
    M = M / fro
    bound = 1.0 / jnp.sqrt(jnp.float32(n_slice))
    fc_w = jax.random.uniform(k_w, (n_slice,), jnp.float32, -bound, bound)
    fc_b = jax.random.uniform(k_b, (1,), jnp.float32, -bound, bound)
    return M, fc_w, fc_b


def reference_forward(z_q, z_c, M, fc_w, fc_b):
    """Plain-JAX reference mirroring the PyTorch forward (eval-mode dropout)."""
    s = jnp.einsum("qd,sde,ce->qcs", z_q, M, z_c)
    v = jnp.maximum(s, 0.0)
    return jnp.einsum("qcs,s->qc", v, fc_w) + fc_b[0]


if __name__ == "__main__":
    input_dim = 32
    n_slice = 16
    n_query = 10   # non-aligned: exercises query padding (tq = 16)
    n_class = 5    # non-aligned: exercises class padding to 128 lanes

    key = jax.random.PRNGKey(0)
    k_params, k_q, k_c, k_q2 = jax.random.split(key, 4)
    M, fc_w, fc_b = init_params(k_params, input_dim, n_slice)

    z_q = jax.random.normal(k_q, (n_query, input_dim), dtype=jnp.float32)
    z_c = jax.random.normal(k_c, (n_class, input_dim), dtype=jnp.float32)

    # Reference uses the same bf16-rounded inputs the kernel feeds the MXU,
    # with f32 math; tolerance covers the in-kernel bf16 intermediate.
    zq_r = z_q.astype(jnp.bfloat16).astype(jnp.float32)
    zc_r = z_c.astype(jnp.bfloat16).astype(jnp.float32)
    M_r = M.astype(jnp.bfloat16).astype(jnp.float32)
    ref = reference_forward(zq_r, zc_r, M_r, fc_w, fc_b)

    # 1) default config: M fully VMEM-resident, single slice group.
    out = jax.block_until_ready(ntl_relation_forward(z_q, z_c, M, fc_w, fc_b))
    assert out.shape == (n_query, n_class)
    assert jnp.allclose(out, ref, atol=2e-2, rtol=2e-2), "default-path mismatch"

    # 2) forced slice grouping (16 % 3 != 0 -> padded slices): exercises the
    #    "arbitrary" accumulation axis / large-M fallback path.
    out_g = jax.block_until_ready(
        ntl_relation_forward(z_q, z_c, M, fc_w, fc_b, slice_group=3))
    assert jnp.allclose(out_g, ref, atol=2e-2, rtol=2e-2), "grouped-path mismatch"

    # 3) more queries -> two tiles on the "parallel" query axis.
    n_query2 = 40
    z_q2 = jax.random.normal(k_q2, (n_query2, input_dim), dtype=jnp.float32)
    ref2 = reference_forward(z_q2.astype(jnp.bfloat16).astype(jnp.float32),
                             zc_r, M_r, fc_w, fc_b)
    out2 = jax.block_until_ready(ntl_relation_forward(z_q2, z_c, M, fc_w, fc_b))
    assert out2.shape == (n_query2, n_class)
    assert jnp.allclose(out2, ref2, atol=2e-2, rtol=2e-2), "multi-tile mismatch"

    print("KERNEL_OK")
</pallas_src>

<mosaic_0001>
module attributes {stable_mosaic.version = 11 : i64} {
  func.func @kernel(%arg0: i32, %arg1: i32, %arg2: memref<1xf32, #tpu.memory_space<smem>>, %arg3: memref<16x128xbf16, #tpu.memory_space<vmem>>, %arg4: memref<128x2048xbf16, #tpu.memory_space<vmem>>, %arg5: memref<128x128xbf16, #tpu.memory_space<vmem>>, %arg6: memref<16x128xf32, #tpu.memory_space<vmem>>, %arg7: memref<16x128xf32, #tpu.memory_space<vmem>>) attributes {dimension_semantics = [#tpu.dimension_semantics<parallel>, #tpu.dimension_semantics<arbitrary>], iteration_bounds = array<i64: 1, 1>, scalar_prefetch = 0 : i64, scratch_operands = 1 : i64, tpu.core_type = #tpu.core_type<tc>, window_params = [{transform_indices = @transform_0, window_bounds = array<i64: 1>}, {pipeline_mode = #tpu.pipeline_mode<synchronous>, transform_indices = @transform_1, window_bounds = array<i64: 16, 128>}, {pipeline_mode = #tpu.pipeline_mode<synchronous>, transform_indices = @transform_2, window_bounds = array<i64: 128, 2048>}, {pipeline_mode = #tpu.pipeline_mode<synchronous>, transform_indices = @transform_3, window_bounds = array<i64: 128, 128>}, {transform_indices = @transform_4, window_bounds = array<i64: 16, 128>}]} {
    %c0_i32 = arith.constant 0 : i32
    %0 = arith.cmpi eq, %arg1, %c0_i32 : i32
    %1 = arith.extui %0 : i1 to i32
    %c0_i32_0 = arith.constant 0 : i32
    %2 = arith.cmpi ne, %1, %c0_i32_0 : i32
    scf.if %2 {
      %cst = arith.constant 0.000000e+00 : f32
      %8 = vector.broadcast %cst : f32 to vector<16x128xf32>
      %c0 = arith.constant 0 : index
      %c0_8 = arith.constant 0 : index
      %9 = vector.load %arg7[%c0, %c0_8] : memref<16x128xf32, #tpu.memory_space<vmem>>, vector<16x128xf32>
      tpu.vector_store %arg7[%c0, %c0_8], %8 {strides = array<i32>} : memref<16x128xf32, #tpu.memory_space<vmem>>, vector<16x128xf32>,
    } else {
    }
    %c0_i32_1 = arith.constant 0 : i32
    %c7_i32 = arith.constant 7 : i32
    %3 = arith.addi %c0_i32_1, %c7_i32 : i32
    %c1_i32 = arith.constant 1 : i32
    scf.for %arg8 = %c0_i32_1 to %3 step %c1_i32  : i32 {
      %c1_i32_8 = arith.constant 1 : i32
      %8 = arith.muli %arg8, %c1_i32_8 : i32
      %c0_i32_9 = arith.constant 0 : i32
      %9 = arith.addi %c0_i32_9, %8 : i32
      %c0 = arith.constant 0 : index
      %c0_10 = arith.constant 0 : index
      %10 = vector.load %arg7[%c0, %c0_10] : memref<16x128xf32, #tpu.memory_space<vmem>>, vector<16x128xf32>
      %c128_i32 = arith.constant 128 : i32
      %11 = arith.muli %9, %c128_i32 : i32
      %12 = tpu.assume_multiple %11, 128 : i32
      %c0_11 = arith.constant 0 : index
      %13 = arith.index_cast %12 : i32 to index
      %14 = vector.load %arg4[%c0_11, %13] : memref<128x2048xbf16, #tpu.memory_space<vmem>>, vector<128x128xbf16>
      %c0_12 = arith.constant 0 : index
      %c0_13 = arith.constant 0 : index
      %15 = vector.load %arg3[%c0_12, %c0_13] : memref<16x128xbf16, #tpu.memory_space<vmem>>, vector<16x128xbf16>
      %cst = arith.constant dense<0.000000e+00> : vector<16x128xf32>
      %16 = tpu.matmul %15, %14, %cst {dimension_numbers = #tpu.dot_dimension_numbers<[1], [0], [0], [1], [0, 0, 1, 1], [], []>} : vector<16x128xbf16>, vector<128x128xbf16>, vector<16x128xf32> -> vector<16x128xf32>
      %17 = arith.truncf %16 : vector<16x128xf32> to vector<16x128xbf16>
      %c0_14 = arith.constant 0 : index
      %c0_15 = arith.constant 0 : index
      %18 = vector.load %arg5[%c0_14, %c0_15] : memref<128x128xbf16, #tpu.memory_space<vmem>>, vector<128x128xbf16>
      %cst_16 = arith.constant dense<0.000000e+00> : vector<16x128xf32>
      %19 = tpu.matmul %17, %18, %cst_16 {dimension_numbers = #tpu.dot_dimension_numbers<[1], [0], [0], [1], [0, 0, 1, 1], [], []>} : vector<16x128xbf16>, vector<128x128xbf16>, vector<16x128xf32> -> vector<16x128xf32>
      %cst_17 = arith.constant 0.000000e+00 : f32
      %20 = vector.broadcast %cst_17 : f32 to vector<16x128xf32>
      %21 = arith.maximumf %19, %20 : vector<16x128xf32>
      %22 = arith.addf %10, %21 : vector<16x128xf32>
      %c0_18 = arith.constant 0 : index
      %c0_19 = arith.constant 0 : index
      %23 = vector.load %arg7[%c0_18, %c0_19] : memref<16x128xf32, #tpu.memory_space<vmem>>, vector<16x128xf32>
      tpu.vector_store %arg7[%c0_18, %c0_19], %22 {strides = array<i32>} : memref<16x128xf32, #tpu.memory_space<vmem>>, vector<16x128xf32>,
    }
    %c7_i32_2 = arith.constant 7 : i32
    %c0_i32_3 = arith.constant 0 : i32
    %c9_i32 = arith.constant 9 : i32
    %4 = arith.addi %c0_i32_3, %c9_i32 : i32
    %c1_i32_4 = arith.constant 1 : i32
    scf.for %arg8 = %c0_i32_3 to %4 step %c1_i32_4  : i32 {
      %c1_i32_8 = arith.constant 1 : i32
      %8 = arith.muli %arg8, %c1_i32_8 : i32
      %c7_i32_9 = arith.constant 7 : i32
      %9 = arith.addi %c7_i32_9, %8 : i32
      %c0 = arith.constant 0 : index
      %c0_10 = arith.constant 0 : index
      %10 = vector.load %arg7[%c0, %c0_10] : memref<16x128xf32, #tpu.memory_space<vmem>>, vector<16x128xf32>
      %c128_i32 = arith.constant 128 : i32
      %11 = arith.muli %9, %c128_i32 : i32
      %12 = tpu.assume_multiple %11, 128 : i32
      %c0_11 = arith.constant 0 : index
      %13 = arith.index_cast %12 : i32 to index
      %14 = vector.load %arg4[%c0_11, %13] : memref<128x2048xbf16, #tpu.memory_space<vmem>>, vector<128x128xbf16>
      %c0_12 = arith.constant 0 : index
      %c0_13 = arith.constant 0 : index
      %15 = vector.load %arg3[%c0_12, %c0_13] : memref<16x128xbf16, #tpu.memory_space<vmem>>, vector<16x128xbf16>
      %cst = arith.constant dense<0.000000e+00> : vector<16x128xf32>
      %16 = tpu.matmul %15, %14, %cst {dimension_numbers = #tpu.dot_dimension_numbers<[1], [0], [0], [1], [0, 0, 1, 1], [], []>} : vector<16x128xbf16>, vector<128x128xbf16>, vector<16x128xf32> -> vector<16x128xf32>
      %17 = arith.truncf %16 : vector<16x128xf32> to vector<16x128xbf16>
      %c0_14 = arith.constant 0 : index
      %c0_15 = arith.constant 0 : index
      %18 = vector.load %arg5[%c0_14, %c0_15] : memref<128x128xbf16, #tpu.memory_space<vmem>>, vector<128x128xbf16>
      %cst_16 = arith.constant dense<0.000000e+00> : vector<16x128xf32>
      %19 = tpu.matmul %17, %18, %cst_16 {dimension_numbers = #tpu.dot_dimension_numbers<[1], [0], [0], [1], [0, 0, 1, 1], [], []>} : vector<16x128xbf16>, vector<128x128xbf16>, vector<16x128xf32> -> vector<16x128xf32>
      %cst_17 = arith.constant 0.000000e+00 : f32
      %20 = vector.broadcast %cst_17 : f32 to vector<16x128xf32>
      %21 = arith.minimumf %19, %20 : vector<16x128xf32>
      %22 = arith.addf %10, %21 : vector<16x128xf32>
      %c0_18 = arith.constant 0 : index
      %c0_19 = arith.constant 0 : index
      %23 = vector.load %arg7[%c0_18, %c0_19] : memref<16x128xf32, #tpu.memory_space<vmem>>, vector<16x128xf32>
      tpu.vector_store %arg7[%c0_18, %c0_19], %22 {strides = array<i32>} : memref<16x128xf32, #tpu.memory_space<vmem>>, vector<16x128xf32>,
    }
    %c9_i32_5 = arith.constant 9 : i32
    %c0_i32_6 = arith.constant 0 : i32
    %5 = arith.cmpi eq, %arg1, %c0_i32_6 : i32
    %6 = arith.extui %5 : i1 to i32
    %c0_i32_7 = arith.constant 0 : i32
    %7 = arith.cmpi ne, %6, %c0_i32_7 : i32
    scf.if %7 {
      %c0 = arith.constant 0 : index
      %c0_8 = arith.constant 0 : index
      %8 = vector.load %arg7[%c0, %c0_8] : memref<16x128xf32, #tpu.memory_space<vmem>>, vector<16x128xf32>
      %c0_9 = arith.constant 0 : index
      %9 = memref.load %arg2[%c0_9] : memref<1xf32, #tpu.memory_space<smem>>
      %10 = vector.broadcast %9 : f32 to vector<16x128xf32>
      %11 = arith.addf %8, %10 : vector<16x128xf32>
      %c0_10 = arith.constant 0 : index
      %c0_11 = arith.constant 0 : index
      %12 = vector.load %arg6[%c0_10, %c0_11] : memref<16x128xf32, #tpu.memory_space<vmem>>, vector<16x128xf32>
      tpu.vector_store %arg6[%c0_10, %c0_11], %11 {strides = array<i32>} : memref<16x128xf32, #tpu.memory_space<vmem>>, vector<16x128xf32>,
    } else {
    }
    return
  }
  func.func @transform_0(%arg0: i32, %arg1: i32) -> i32 {
    %c0_i32 = arith.constant 0 : i32
    %c0_i32_0 = arith.constant 0 : i32
    return %c0_i32 : i32
  }
  func.func @transform_1(%arg0: i32, %arg1: i32) -> (i32, i32) {
    %c0_i32 = arith.constant 0 : i32
    %c0_i32_0 = arith.constant 0 : i32
    return %arg0, %c0_i32 : i32, i32
  }
  func.func @transform_2(%arg0: i32, %arg1: i32) -> (i32, i32) {
    %c0_i32 = arith.constant 0 : i32
    %c0_i32_0 = arith.constant 0 : i32
    return %c0_i32, %arg1 : i32, i32
  }
  func.func @transform_3(%arg0: i32, %arg1: i32) -> (i32, i32) {
    %c0_i32 = arith.constant 0 : i32
    %c0_i32_0 = arith.constant 0 : i32
    %c0_i32_1 = arith.constant 0 : i32
    return %c0_i32, %c0_i32_0 : i32, i32
  }
  func.func @transform_4(%arg0: i32, %arg1: i32) -> (i32, i32) {
    %c0_i32 = arith.constant 0 : i32
    %c0_i32_0 = arith.constant 0 : i32
    return %arg0, %c0_i32 : i32, i32
  }
}

</mosaic_0001>

<bundles_post_ra>
// kernel: tpu_custom_call.1
= control target key start
LH: loop header
LB: loop body
LE: loop exit
PB: predicated region body
PF: predicated region fallthrough
CT: control target
= control target key end

     0   :  { %s910_s0 = inlined_call_operand.<no memory space> [shape: f32[1], index: 0, kind: input, shape index: {}]   ;;  %s911_s1 = inlined_call_operand.hbm [shape: bf16[16,128], index: 1, kind: input, shape index: {}]   ;;  %s912_s2 = inlined_call_operand.hbm [shape: bf16[128,2048], index: 2, kind: input, shape index: {}]   ;;  %s913_s3 = inlined_call_operand.hbm [shape: bf16[128,128], index: 3, kind: input, shape index: {}]   ;;  %s914_s4 = inlined_call_operand.hbm [shape: f32[16,128], index: 4, kind: output, shape index: {}]  }
   0x1   :  { %9 = sst [smem:[#allocation3]] %s910_s0 }
   0x2   :  { %10 = vsyncpa [#allocation5], 0 }
   0x3   :  { %11 = vsyncpa [#allocation8], 0  ;;  %s32_s19 = sshll.u32 %s912_s2, 4  ;;  %s33_s19 = int_to_ptr.hbm [resolvable:$true] %s32_s19 }
   0x4   :  { %12 = vsyncpa [#allocation6], 0  ;;  %s806_s20 = smov [#allocation7]   ;;  %s19_s24 = sshll.u32 %s911_s1, 4  ;;  %s20_s24 = int_to_ptr.hbm [resolvable:$true] %s19_s24 }
   0x5   :  { %s34_s21 = sshll.u32 %s806_s20, 4  ;;  %s807_s25 = smov 1024   ;;  %s35_s21 = int_to_ptr.vmem [resolvable:$true] %s34_s21 }
   0x6   :  { %s808_s26 = smov 64   ;;  %s809_s0 = smov [#allocation4]  }
   0x7   :  { %40 = dma.hbm_to_vmem [thread:$0]  %s33_s19, 16384, %s35_s21, [#allocation8], %s807_s25, %s807_s25, %s808_s26  }
   0x8   :  { %s21_s27 = sshll.u32 %s809_s0, 4  ;;  %s45_s2 = sshll.u32 %s913_s3, 4  ;;  %s22_s27 = int_to_ptr.vmem [resolvable:$true] %s21_s27  ;;  %s46_s2 = int_to_ptr.hbm [resolvable:$true] %s45_s2 }
   0x9   :  { %s810_s30 = smov 4   ;;  %s811_s5 = smov [#allocation9]  }
   0xa   :  { %27 = dma.hbm_to_vmem [thread:$0]  %s20_s24, 128, %s22_s27, [#allocation5], %s808_s26, %s808_s26, %s810_s30  }
   0xb   :  { %s47_s6 = sshll.u32 %s811_s5, 4  ;;  %s48_s6 = int_to_ptr.vmem [resolvable:$true] %s47_s6 }
   0xc   :  { %53 = dma.hbm_to_vmem [thread:$0]  %s46_s2, 1024, %s48_s6, [#allocation8], %s808_s26, %s808_s26, %s810_s30  }
   0xd   :  { %792 = dma.done.wait [#allocation5], 128  }
   0xe   :  { %793 = vsyncadd [#allocation5], 4294967168 }
   0xf   :  { %794 = dma.done.wait [#allocation8], 17408  }
  0x10   :  { %795 = vsyncadd [#allocation8], 4294949888  ;;  %v812_v0 = vmov 0.0   ;;  %s853_s1 = smov 0  }
  0x11   :  { %70 = vst [vmem:[#allocation2] sm:$0xff] %v812_v0 }
  0x12   :  { %71 = vst [vmem:[#allocation2 + $0x8] sm:$0xff] %v812_v0 }
  0x13 LB: > { %s486_s3 = sshll.u32 %s800_s1, 7  ;;  %v642_v9 = vld [vmem:[#allocation9 + $0x38] sm:$0xff]  ;;  %v641_v11 = vld [vmem:[#allocation9 + $0x30] sm:$0xff]  ;;  %v640_v15 = vld [vmem:[#allocation9 + $0x28] sm:$0xff]  ;;  %s77_s1 = sadd.s32 1, %s800_s1   ;;  %s800_s1 = sphi %s853_s1, %s77_s1  }
  0x14   : > { %s81_s7 = sshra.s32 %s486_s3, 7  ;;  %236 = vmatpush.bf16.msra.mxu1 %v642_v9  ;;  %v639_v19 = vld [vmem:[#allocation9 + $0x20] sm:$0xff]  ;;  %v638_v23 = vld [vmem:[#allocation9 + $0x18] sm:$0xff]  ;;  %v637_v31 = vld [vmem:[#allocation9 + $0x10] sm:$0xff]  ;;  %p74_p0 = scmp.ge.s32.totalorder %s77_s1, 7  }
  0x15   : > { %s487_s8 = sshll.u32 %s81_s7, 2  ;;  %v634_v30 = vld [vmem:[#allocation4] sm:$0xff]  ;;  %v636_v32 = vld [vmem:[#allocation9 + $0x8] sm:$0xff]  ;;  %v635_v33 = vld [vmem:[#allocation9] sm:$0xff]  ;;  %s880_s10 = smov (%p74_p0), 0  }
  0x16   : > { %s859_s9 = scalar_lea.vmem [#allocation7], %s487_s8 }
  0x17   : > { %v522_v1 = vld [vmem:[%s859_s9 + $0x380] sm:$0xf] }
  0x18   : > { %v633_v2 = vld [vmem:[%s859_s9 + $0x3bc] sm:$0xf0]  ;;  %237 = vmatpush.bf16.msra.mxu1 %v641_v11 }
  0x19   : > { %v518_v3 = vld [vmem:[%s859_s9 + $0x300] sm:$0xf]  ;;  %v523_v4 = vor.u32 %v633_v2, %v522_v1  ;;  %v79_v41 = vld [vmem:[#allocation2 + $0x8] sm:$0xff] }
  0x1a   : > { %v632_v5 = vld [vmem:[%s859_s9 + $0x33c] sm:$0xf0] }
  0x1b   : > { %157 = vmatpush.bf16.msra.mxu0 %v523_v4  ;;  %v519_v6 = vor.u32 %v632_v5, %v518_v3  ;;  %v514_v7 = vld [vmem:[%s859_s9 + $0x280] sm:$0xf] }
  0x1c   : > { %v631_v8 = vld [vmem:[%s859_s9 + $0x2bc] sm:$0xf0]  ;;  %238 = vmatpush.bf16.msra.mxu1 %v640_v15 }
  0x1d   : > { %v515_v10 = vor.u32 %v631_v8, %v514_v7  ;;  %v510_v12 = vld [vmem:[%s859_s9 + $0x200] sm:$0xf] }
  0x1e   : > { %v630_v13 = vld [vmem:[%s859_s9 + $0x23c] sm:$0xf0] }
  0x1f   : > { %158 = vmatpush.bf16.msra.mxu0 %v519_v6  ;;  %v511_v14 = vor.u32 %v630_v13, %v510_v12  ;;  %v506_v16 = vld [vmem:[%s859_s9 + $0x180] sm:$0xf] }
  0x20   : > { %v629_v17 = vld [vmem:[%s859_s9 + $0x1bc] sm:$0xf0]  ;;  %239 = vmatpush.bf16.msra.mxu1 %v639_v19 }
  0x21   : > { %v507_v18 = vor.u32 %v629_v17, %v506_v16  ;;  %v502_v20 = vld [vmem:[%s859_s9 + $0x100] sm:$0xf] }
  0x22   : > { %v628_v21 = vld [vmem:[%s859_s9 + $0x13c] sm:$0xf0] }
  0x23   : > { %159 = vmatpush.bf16.msra.mxu0 %v515_v10  ;;  %v503_v22 = vor.u32 %v628_v21, %v502_v20  ;;  %v498_v24 = vld [vmem:[%s859_s9 + $0x80] sm:$0xf] }
  0x24   : > { %v627_v25 = vld [vmem:[%s859_s9 + $0xbc] sm:$0xf0]  ;;  %240 = vmatpush.bf16.msra.mxu1 %v638_v23 }
  0x25   : > { %v499_v26 = vor.u32 %v627_v25, %v498_v24  ;;  %v494_v27 = vld [vmem:[%s859_s9] sm:$0xf] }
  0x26   : > { %v626_v28 = vld [vmem:[%s859_s9 + $0x3c] sm:$0xf0] }
  0x27   : > { %160 = vmatpush.bf16.msra.mxu0 %v511_v14  ;;  %v495_v29 = vor.u32 %v626_v28, %v494_v27  ;;  %v78_v37 = vld [vmem:[#allocation2] sm:$0xff] }
  0x28   : > { %241 = vmatpush.bf16.msra.mxu1 %v637_v31 }
  0x2b   : > { %161 = vmatpush.bf16.msra.mxu0 %v507_v18 }
  0x2c   : > { %242 = vmatpush.bf16.msra.mxu1 %v636_v32 }
  0x2f   : > { %162 = vmatpush.bf16.msra.mxu0 %v503_v22 }
  0x30   : > { %243 = vmatpush.bf16.msra.mxu1 %v635_v33 }
  0x33   : > { %163 = vmatpush.bf16.msra.mxu0 %v499_v26 }
  0x37   : > { %164 = vmatpush.bf16.msra.mxu0 %v495_v29 }
  0x3a   : > { %165 = vmatmul.bf16.vlgmr.msra.gmra.mxu0 %v634_v30 }
  0xb7   : > { %v166_v34 = vpop.f32.mrf.mxu0 }
  0xbf   : > { %v168_v35 = vpop.f32.mrf.mxu0 }
  0xc0   : > { %v171_v36 = vpack.c.bf16 %v168_v35, %v166_v34 }
  0xc2   : > { %244 = vmatmul.bf16.vlgmr.msra.gmra.mxu1 %v171_v36 }
 0x13f   : > { %v245_v38 = vpop.f32.mrf.mxu1 }
 0x140   : > { %v250_v39 = vmax.f32 %v245_v38, 0.0 }
 0x142   : > { %v252_v40 = vadd.f32 %v250_v39, %v78_v37 }
 0x144   : > { %254 = vst [vmem:[#allocation2] sm:$0xff] %v252_v40 }
 0x147   : > { %v247_v42 = vpop.f32.mrf.mxu1 }
 0x148   : > { %v251_v43 = vmax.f32 %v247_v42, 0.0  ;;  %76 = sbr.rel (!%p74_p0) target bundleno = 19 (0x13), region = 72 }
 0x14a   : > { %v253_v44 = vadd.f32 %v251_v43, %v79_v41 }
 0x14c   : > { %255 = vst [vmem:[#allocation2 + $0x8] sm:$0xff] %v253_v44 }
 0x14d LB: > { %s643_s11 = sshll.u32 %s804_s10, 7  ;;  %v661_v53 = vld [vmem:[#allocation9 + $0x38] sm:$0xff]  ;;  %v660_v55 = vld [vmem:[#allocation9 + $0x30] sm:$0xff]  ;;  %v659_v59 = vld [vmem:[#allocation9 + $0x28] sm:$0xff]  ;;  %s261_s10 = sadd.s32 1, %s804_s10   ;;  %s804_s10 = sphi %s880_s10, %s261_s10  }
 0x14e   : > { %s644_s12 = sadd.s32 896, %s643_s11  ;;  %421 = vmatpush.bf16.msra.mxu1 %v661_v53  ;;  %v658_v63 = vld [vmem:[#allocation9 + $0x20] sm:$0xff]  ;;  %v657_v3 = vld [vmem:[#allocation9 + $0x18] sm:$0xff]  ;;  %v656_v11 = vld [vmem:[#allocation9 + $0x10] sm:$0xff]  ;;  %p258_p1 = scmp.ge.s32.totalorder %s261_s10, 9  }
 0x14f   : > { %s266_s13 = sshra.s32 %s644_s12, 7  ;;  %v653_v10 = vld [vmem:[#allocation4] sm:$0xff]  ;;  %v655_v12 = vld [vmem:[#allocation9 + $0x8] sm:$0xff]  ;;  %v654_v13 = vld [vmem:[#allocation9] sm:$0xff]  ;;  %s446_s16 = sld [smem:[#allocation3]] (%p258_p1) }
 0x150   : > { %s557_s14 = sshll.u32 %s266_s13, 2  ;;  %v263_v17 = vld [vmem:[#allocation2] sm:$0xff]  ;;  %s813_s17 = smov (%p258_p1), [#allocation10]  }
 0x151   : > { %s886_s15 = scalar_lea.vmem [#allocation7], %s557_s14  ;;  %s456_s18 = sshll.u32 (%p258_p1), %s813_s17, 4  ;;  %s457_s18 = int_to_ptr.vmem [resolvable:$true] %s456_s18 }
 0x152   : > { %v592_v45 = vld [vmem:[%s886_s15 + $0x380] sm:$0xf]  ;;  %422 = vmatpush.bf16.msra.mxu1 %v660_v55  ;;  %s458_s21 = sshll.u32 (%p258_p1), %s914_s4, 4  ;;  %s814_s22 = smov (%p258_p1), 128   ;;  %s459_s21 = int_to_ptr.hbm [resolvable:$true] %s458_s21 }
 0x153   : > { %v652_v46 = vld [vmem:[%s886_s15 + $0x3bc] sm:$0xf0]  ;;  %v264_v21 = vld [vmem:[#allocation2 + $0x8] sm:$0xff]  ;;  %s815_s23 = smov (%p258_p1), 8  }
 0x154   : > { %v588_v47 = vld [vmem:[%s886_s15 + $0x300] sm:$0xf]  ;;  %v593_v48 = vor.u32 %v652_v46, %v592_v45 }
 0x155   : > { %v651_v49 = vld [vmem:[%s886_s15 + $0x33c] sm:$0xf0]  ;;  %v447_v27 = vstv (%p258_p1), %s446_s16 }
 0x156   : > { %342 = vmatpush.bf16.msra.mxu0 %v593_v48  ;;  %v589_v50 = vor.u32 %v651_v49, %v588_v47  ;;  %v584_v51 = vld [vmem:[%s886_s15 + $0x280] sm:$0xf]  ;;  %423 = vmatpush.bf16.msra.mxu1 %v659_v59 }
 0x157   : > { %v650_v52 = vld [vmem:[%s886_s15 + $0x2bc] sm:$0xf0] }
 0x158   : > { %v585_v54 = vor.u32 %v650_v52, %v584_v51  ;;  %v580_v56 = vld [vmem:[%s886_s15 + $0x200] sm:$0xf] }
 0x159   : > { %v649_v57 = vld [vmem:[%s886_s15 + $0x23c] sm:$0xf0] }
 0x15a   : > { %343 = vmatpush.bf16.msra.mxu0 %v589_v50  ;;  %v581_v58 = vor.u32 %v649_v57, %v580_v56  ;;  %v576_v60 = vld [vmem:[%s886_s15 + $0x180] sm:$0xf]  ;;  %424 = vmatpush.bf16.msra.mxu1 %v658_v63 }
 0x15b   : > { %v648_v61 = vld [vmem:[%s886_s15 + $0x1bc] sm:$0xf0] }
 0x15c   : > { %v577_v62 = vor.u32 %v648_v61, %v576_v60  ;;  %v572_v0 = vld [vmem:[%s886_s15 + $0x100] sm:$0xf] }
 0x15d   : > { %v647_v1 = vld [vmem:[%s886_s15 + $0x13c] sm:$0xf0] }
 0x15e   : > { %344 = vmatpush.bf16.msra.mxu0 %v585_v54  ;;  %v573_v2 = vor.u32 %v647_v1, %v572_v0  ;;  %v568_v4 = vld [vmem:[%s886_s15 + $0x80] sm:$0xf]  ;;  %425 = vmatpush.bf16.msra.mxu1 %v657_v3 }
 0x15f   : > { %v646_v5 = vld [vmem:[%s886_s15 + $0xbc] sm:$0xf0] }
 0x160   : > { %v569_v6 = vor.u32 %v646_v5, %v568_v4  ;;  %v564_v7 = vld [vmem:[%s886_s15] sm:$0xf] }
 0x161   : > { %v645_v8 = vld [vmem:[%s886_s15 + $0x3c] sm:$0xf0] }
 0x162   : > { %345 = vmatpush.bf16.msra.mxu0 %v581_v58  ;;  %v565_v9 = vor.u32 %v645_v8, %v564_v7  ;;  %426 = vmatpush.bf16.msra.mxu1 %v656_v11 }
 0x166   : > { %346 = vmatpush.bf16.msra.mxu0 %v577_v62  ;;  %427 = vmatpush.bf16.msra.mxu1 %v655_v12 }
 0x16a   : > { %347 = vmatpush.bf16.msra.mxu0 %v573_v2  ;;  %428 = vmatpush.bf16.msra.mxu1 %v654_v13 }
 0x16e   : > { %348 = vmatpush.bf16.msra.mxu0 %v569_v6 }
 0x172   : > { %349 = vmatpush.bf16.msra.mxu0 %v565_v9 }
 0x175   : > { %350 = vmatmul.bf16.vlgmr.msra.gmra.mxu0 %v653_v10 }
 0x1f2   : > { %v351_v14 = vpop.f32.mrf.mxu0 }
 0x1fa   : > { %v353_v15 = vpop.f32.mrf.mxu0 }
 0x1fb   : > { %v356_v16 = vpack.c.bf16 %v353_v15, %v351_v14 }
 0x1fd   : > { %429 = vmatmul.bf16.vlgmr.msra.gmra.mxu1 %v356_v16 }
 0x27a   : > { %v430_v18 = vpop.f32.mrf.mxu1 }
 0x27b   : > { %v435_v19 = vmin.f32 %v430_v18, 0.0 }
 0x27d   : > { %v437_v20 = vadd.f32 %v435_v19, %v263_v17 }
 0x27f   : > { %439 = vst [vmem:[#allocation2] sm:$0xff] %v437_v20 }
 0x282   : > { %v432_v22 = vpop.f32.mrf.mxu1 }
 0x283   : > { %v436_v23 = vmin.f32 %v432_v22, 0.0  ;;  %260 = sbr.rel (!%p258_p1) target bundleno = 333 (0x14d), region = 83 }
 0x285   : > { %v438_v24 = vadd.f32 %v436_v23, %v264_v21 }
 0x286   :  { %v444_v25 = vld [vmem:[#allocation2] sm:$0xff] (%p258_p1) }
 0x287   : > { %440 = vst [vmem:[#allocation2 + $0x8] sm:$0xff] %v438_v24  ;;  %v448_v28 = vadd.f32 (%p258_p1), %v447_v27, %v444_v25 }
 0x289   :  { %450 = vst [vmem:[#allocation10] sm:$0xff] %v448_v28 }
 0x28e   :  { %v445_v26 = vld [vmem:[#allocation2 + $0x8] sm:$0xff] }
 0x28f   :  { %v449_v29 = vadd.f32 %v447_v27, %v445_v26 }
 0x291   :  { %451 = vst [vmem:[#allocation10 + $0x8] sm:$0xff] %v449_v29 }
 0x292   :  { %464 = dma.vmem_to_hbm [thread:$0]  %s457_s18, 256, %s459_s21, [#allocation6], %s814_s22, %s814_s22, %s815_s23  }
 0x293   :  { %796 = dma.done.wait [#allocation6], 256  }
 0x294   :  { %797 = vsyncadd [#allocation6], 4294967040 }
 0x295   :  { %469 = vsyncpa [#allocation5], 1 }
 0x296   :  { %470 = vsyncpa [#allocation8], 1 }
 0x297   :  { %471 = vsyncpa [#allocation6], 1 }

</bundles_post_ra>
